<compile_context>
chip_gen: v7x
topology: tpu7x:2x2x1
jax: 0.10.0
libtpu: 0.0.40
codegen_flags: <defaults>
</compile_context>

<pallas_src>
from functools import partial

import jax
import jax.numpy as jnp
from jax.experimental import pallas as pl
from jax.experimental.pallas import tpu as pltpu

LANES = 128      # TPU lane width; weight slabs are zero-padded to 128 lanes.
SUB_ALIGN = 16   # bf16 packs 16 sublanes per vreg; keep every slab 16-row aligned.


def _round_up(n, m):
    return ((n + m - 1) // m) * m


def _cdiv(a, b):
    return -(-a // b)


def _slab_offsets(state_size):
    """Row offsets of each section inside the packed (P_ROWS, 128) bf16 slab."""
    w1_rows = _round_up(max(state_size, 1), SUB_ALIGN)
    r_w1 = 0
    r_b1 = r_w1 + w1_rows
    r_w2 = r_b1 + SUB_ALIGN
    r_b2 = r_w2 + LANES
    r_w3 = r_b2 + SUB_ALIGN
    r_b3 = r_w3 + LANES
    p_rows = r_b3 + SUB_ALIGN
    return r_w1, r_b1, r_w2, r_b2, r_w3, r_b3, p_rows


def pack_params(w1, b1, w2, b2, w3, b3):
    """Pack all parameters once into a single bf16 (P_ROWS, 128) slab (one DMA).

    Padded weight rows/cols and padded bias lanes are exactly zero, so padded hidden
    lanes stay identically zero through ReLU and the math matches the unpadded model.
    Call this once per parameter update, not per forward.
    """
    state_size, fc1 = w1.shape
    fc2 = w2.shape[1]
    act = w3.shape[1]
    assert state_size <= LANES and fc1 <= LANES and fc2 <= LANES and act <= LANES
    assert w2.shape[0] == fc1 and w3.shape[0] == fc2

    r_w1, r_b1, r_w2, r_b2, r_w3, r_b3, p_rows = _slab_offsets(state_size)

    def pad_w(w, rows):
        out = jnp.zeros((rows, LANES), jnp.float32)
        return out.at[: w.shape[0], : w.shape[1]].set(w.astype(jnp.float32))

    def pad_b(b):
        out = jnp.zeros((SUB_ALIGN, LANES), jnp.float32)
        return out.at[0, : b.shape[0]].set(b.astype(jnp.float32))

    slab = jnp.concatenate(
        [
            pad_w(w1, r_b1 - r_w1), pad_b(b1),
            pad_w(w2, LANES), pad_b(b2),
            pad_w(w3, LANES), pad_b(b3),
        ],
        axis=0,
    )
    assert slab.shape == (p_rows, LANES)
    return slab.astype(jnp.bfloat16)


def _make_kernel(state_size, action_size, offs):
    r_w1, r_b1, r_w2, r_b2, r_w3, r_b3, _ = offs

    def kernel(x_ref, p_ref, out_ref):
        """Fused 3-layer MLP on one batch tile.

        x_ref:   (TB, state_size) f32 states (narrow, no lane padding)
        p_ref:   (P_ROWS, 128)    bf16 packed weights + biases (VMEM-resident)
        out_ref: (TB, action_size) f32 Q-values (narrow writeback)
        """
        x = x_ref[...].astype(jnp.bfloat16)                      # (TB, S)

        # Layer 1: (TB, S) @ (S, 128) -> f32, bias + ReLU in f32.
        w1 = p_ref[r_w1:r_w1 + state_size, :]
        b1 = p_ref[r_b1:r_b1 + 1, :].astype(jnp.float32)
        h = jnp.dot(x, w1, preferred_element_type=jnp.float32) + b1
        h = jnp.maximum(h, 0.0)

        # Layer 2: (TB, 128) @ (128, 128); padded rows/lanes are zero.
        w2 = p_ref[r_w2:r_w2 + LANES, :]
        b2 = p_ref[r_b2:r_b2 + 1, :].astype(jnp.float32)
        h = jnp.dot(h.astype(jnp.bfloat16), w2, preferred_element_type=jnp.float32) + b2
        h = jnp.maximum(h, 0.0)

        # Layer 3: (TB, 128) @ (128, 128); only the first action_size lanes are real.
        w3 = p_ref[r_w3:r_w3 + LANES, :]
        b3 = p_ref[r_b3:r_b3 + 1, :].astype(jnp.float32)
        out = jnp.dot(h.astype(jnp.bfloat16), w3, preferred_element_type=jnp.float32) + b3
        out_ref[...] = out[:, :action_size]

    return kernel


def _choose_block_batch(batch):
    pb8 = _round_up(max(batch, 1), 8)
    if pb8 <= 256:
        # Small batch: one tile; dispatch-dominated regime anyway.
        return pb8
    # Large batch: an EVEN number of tiles (>= 2) so v7x's two TensorCores both get
    # work under dimension_semantics=("parallel",); tiles sized from ceil(batch/n)
    # (8-aligned) to avoid a whole wasted tile of padding, capped near 1024 rows so
    # v5e/v6e amortize the ~0.35us per-grid-step overhead.  VMEM use stays < 5 MiB.
    n_tiles = 2 * _cdiv(pb8, 2 * 1024)
    return _round_up(_cdiv(pb8, n_tiles), 8)


@partial(jax.jit, static_argnames=("action_size", "block_batch"))
def qnetwork_forward(x, packed, *, action_size, block_batch=None):
    """QNetwork forward.  x: (batch, state_size) f32; packed: pack_params(...) slab.

    Returns (batch, action_size) f32.
    """
    batch, state_size = x.shape
    offs = _slab_offsets(state_size)
    p_rows = offs[-1]
    assert packed.shape == (p_rows, LANES)

    if block_batch is None:
        block_batch = _choose_block_batch(batch)
    padded_batch = _round_up(batch, block_batch)
    if padded_batch != batch:
        # Row-pad only (fuses under jit); no lane padding anywhere.
        x = jnp.pad(x, ((0, padded_batch - batch), (0, 0)))

    grid = (padded_batch // block_batch,)
    out = pl.pallas_call(
        _make_kernel(state_size, action_size, offs),
        out_shape=jax.ShapeDtypeStruct((padded_batch, action_size), jnp.float32),
        grid=grid,
        in_specs=[
            # Activations: narrow (TB, state_size) blocks, tiled over the batch axis.
            pl.BlockSpec((block_batch, state_size), lambda i: (i, 0)),
            # Packed parameters: constant index_map -> single slab, VMEM-resident.
            pl.BlockSpec((p_rows, LANES), lambda i: (0, 0)),
        ],
        # Narrow writeback: only action_size lanes per row hit HBM.
        out_specs=pl.BlockSpec((block_batch, action_size), lambda i: (i, 0)),
        compiler_params=pltpu.CompilerParams(
            # Batch tiles are independent -> split across TensorCores (v7x megacore).
            dimension_semantics=("parallel",),
        ),
    )(x, packed)
    return out[:batch]


def init_linear(key, in_features, out_features):
    # Mirrors nn.Linear default init: U(-1/sqrt(in), 1/sqrt(in)).
    kw, kb = jax.random.split(key)
    bound = 1.0 / (in_features ** 0.5)
    w = jax.random.uniform(kw, (in_features, out_features), jnp.float32, -bound, bound)
    b = jax.random.uniform(kb, (out_features,), jnp.float32, -bound, bound)
    return w, b


if __name__ == "__main__":
    state_size = 8
    action_size = 4
    fc1_units = 64
    fc2_units = 64
    batch = 32

    key = jax.random.PRNGKey(0)
    k_x, k1, k2, k3 = jax.random.split(key, 4)

    x = jax.random.normal(k_x, (batch, state_size), jnp.float32)
    w1, b1 = init_linear(k1, state_size, fc1_units)
    w2, b2 = init_linear(k2, fc1_units, fc2_units)
    w3, b3 = init_linear(k3, fc2_units, action_size)

    # Pack once (hoisted out of the forward path).
    packed = jax.block_until_ready(pack_params(w1, b1, w2, b2, w3, b3))

    out = jax.block_until_ready(qnetwork_forward(x, packed, action_size=action_size))

    # Pure-JAX f32 reference (kernel uses bf16 operands -> relaxed tolerance).
    ref = jnp.maximum(x @ w1 + b1[None, :], 0.0)
    ref = jnp.maximum(ref @ w2 + b2[None, :], 0.0)
    ref = ref @ w3 + b3[None, :]
    assert out.shape == (batch, action_size)
    assert jnp.allclose(out, ref, atol=5e-2, rtol=5e-2)

    # Non-multiple-of-8 batch (exercises the row-pad + slice path).
    out7 = jax.block_until_ready(qnetwork_forward(x[:7], packed, action_size=action_size))
    assert out7.shape == (7, action_size)
    assert jnp.allclose(out7, ref[:7], atol=5e-2, rtol=5e-2)

    # Larger batch (exercises the multi-tile, grid >= 2 parallel path).
    xb = jax.random.normal(k_x, (520, state_size), jnp.float32)
    refb = jnp.maximum(xb @ w1 + b1[None, :], 0.0)
    refb = jnp.maximum(refb @ w2 + b2[None, :], 0.0)
    refb = refb @ w3 + b3[None, :]
    outb = jax.block_until_ready(qnetwork_forward(xb, packed, action_size=action_size))
    assert outb.shape == (520, action_size)
    assert jnp.allclose(outb, refb, atol=5e-2, rtol=5e-2)

    print("KERNEL_OK")
</pallas_src>

<mosaic_0001>
module attributes {stable_mosaic.version = 11 : i64} {
  func.func @kernel(%arg0: i32, %arg1: memref<32x8xf32, #tpu.memory_space<vmem>>, %arg2: memref<320x128xbf16, #tpu.memory_space<vmem>>, %arg3: memref<32x4xf32, #tpu.memory_space<vmem>>) attributes {dimension_semantics = [#tpu.dimension_semantics<parallel>], iteration_bounds = array<i64: 1>, scalar_prefetch = 0 : i64, scratch_operands = 0 : i64, tpu.core_type = #tpu.core_type<tc>, window_params = [{transform_indices = @transform_0, window_bounds = array<i64: 32, 8>}, {pipeline_mode = #tpu.pipeline_mode<synchronous>, transform_indices = @transform_1, window_bounds = array<i64: 320, 128>}, {transform_indices = @transform_2, window_bounds = array<i64: 32, 4>}]} {
    %c0 = arith.constant 0 : index
    %c0_0 = arith.constant 0 : index
    %0 = vector.load %arg1[%c0, %c0_0] : memref<32x8xf32, #tpu.memory_space<vmem>>, vector<32x8xf32>
    %1 = arith.truncf %0 : vector<32x8xf32> to vector<32x8xbf16>
    %c0_1 = arith.constant 0 : index
    %c0_2 = arith.constant 0 : index
    %2 = vector.load %arg2[%c0_1, %c0_2] : memref<320x128xbf16, #tpu.memory_space<vmem>>, vector<8x128xbf16>
    %c16 = arith.constant 16 : index
    %c0_3 = arith.constant 0 : index
    %3 = vector.load %arg2[%c16, %c0_3] : memref<320x128xbf16, #tpu.memory_space<vmem>>, vector<1x128xbf16>
    %4 = arith.extf %3 : vector<1x128xbf16> to vector<1x128xf32>
    %cst = arith.constant dense<0.000000e+00> : vector<32x128xf32>
    %5 = tpu.matmul %1, %2, %cst {dimension_numbers = #tpu.dot_dimension_numbers<[1], [0], [0], [1], [0, 0, 1, 1], [], []>} : vector<32x8xbf16>, vector<8x128xbf16>, vector<32x128xf32> -> vector<32x128xf32>
    %6 = vector.broadcast %4 : vector<1x128xf32> to vector<32x128xf32>
    %7 = arith.addf %5, %6 : vector<32x128xf32>
    %cst_4 = arith.constant 0.000000e+00 : f32
    %8 = vector.broadcast %cst_4 : f32 to vector<32x128xf32>
    %9 = arith.maximumf %7, %8 : vector<32x128xf32>
    %c32 = arith.constant 32 : index
    %c0_5 = arith.constant 0 : index
    %10 = vector.load %arg2[%c32, %c0_5] : memref<320x128xbf16, #tpu.memory_space<vmem>>, vector<128x128xbf16>
    %c160 = arith.constant 160 : index
    %c0_6 = arith.constant 0 : index
    %11 = vector.load %arg2[%c160, %c0_6] : memref<320x128xbf16, #tpu.memory_space<vmem>>, vector<1x128xbf16>
    %12 = arith.extf %11 : vector<1x128xbf16> to vector<1x128xf32>
    %13 = arith.truncf %9 : vector<32x128xf32> to vector<32x128xbf16>
    %cst_7 = arith.constant dense<0.000000e+00> : vector<32x128xf32>
    %14 = tpu.matmul %13, %10, %cst_7 {dimension_numbers = #tpu.dot_dimension_numbers<[1], [0], [0], [1], [0, 0, 1, 1], [], []>} : vector<32x128xbf16>, vector<128x128xbf16>, vector<32x128xf32> -> vector<32x128xf32>
    %15 = vector.broadcast %12 : vector<1x128xf32> to vector<32x128xf32>
    %16 = arith.addf %14, %15 : vector<32x128xf32>
    %cst_8 = arith.constant 0.000000e+00 : f32
    %17 = vector.broadcast %cst_8 : f32 to vector<32x128xf32>
    %18 = arith.maximumf %16, %17 : vector<32x128xf32>
    %c176 = arith.constant 176 : index
    %c0_9 = arith.constant 0 : index
    %19 = vector.load %arg2[%c176, %c0_9] : memref<320x128xbf16, #tpu.memory_space<vmem>>, vector<128x128xbf16>
    %c304 = arith.constant 304 : index
    %c0_10 = arith.constant 0 : index
    %20 = vector.load %arg2[%c304, %c0_10] : memref<320x128xbf16, #tpu.memory_space<vmem>>, vector<1x128xbf16>
    %21 = arith.extf %20 : vector<1x128xbf16> to vector<1x128xf32>
    %22 = arith.truncf %18 : vector<32x128xf32> to vector<32x128xbf16>
    %cst_11 = arith.constant dense<0.000000e+00> : vector<32x128xf32>
    %23 = tpu.matmul %22, %19, %cst_11 {dimension_numbers = #tpu.dot_dimension_numbers<[1], [0], [0], [1], [0, 0, 1, 1], [], []>} : vector<32x128xbf16>, vector<128x128xbf16>, vector<32x128xf32> -> vector<32x128xf32>
    %24 = vector.broadcast %21 : vector<1x128xf32> to vector<32x128xf32>
    %25 = arith.addf %23, %24 : vector<32x128xf32>
    %26 = vector.extract_strided_slice %25 {offsets = [0, 0], sizes = [32, 4], strides = [1, 1]} : vector<32x128xf32> to vector<32x4xf32>
    %c0_12 = arith.constant 0 : index
    %c0_13 = arith.constant 0 : index
    %27 = vector.load %arg3[%c0_12, %c0_13] : memref<32x4xf32, #tpu.memory_space<vmem>>, vector<32x4xf32>
    tpu.vector_store %arg3[%c0_12, %c0_13], %26 {strides = array<i32>} : memref<32x4xf32, #tpu.memory_space<vmem>>, vector<32x4xf32>,
    return
  }
  func.func @transform_0(%arg0: i32) -> (i32, i32) {
    %c0_i32 = arith.constant 0 : i32
    %c0_i32_0 = arith.constant 0 : i32
    return %arg0, %c0_i32 : i32, i32
  }
  func.func @transform_1(%arg0: i32) -> (i32, i32) {
    %c0_i32 = arith.constant 0 : i32
    %c0_i32_0 = arith.constant 0 : i32
    %c0_i32_1 = arith.constant 0 : i32
    return %c0_i32, %c0_i32_0 : i32, i32
  }
  func.func @transform_2(%arg0: i32) -> (i32, i32) {
    %c0_i32 = arith.constant 0 : i32
    %c0_i32_0 = arith.constant 0 : i32
    return %arg0, %c0_i32 : i32, i32
  }
}

</mosaic_0001>

<bundles_post_ra>
// kernel: qnetwork_forward.1
= control target key start
LH: loop header
LB: loop body
LE: loop exit
PB: predicated region body
PF: predicated region fallthrough
CT: control target
= control target key end

     0   :  { %7 = vsyncpa [#allocation3], 0  ;;  %s490_s9 = smov [#allocation2]   ;;  %s544_s0 = inlined_call_operand.vmem [shape: f32[32,8], index: 0, kind: input, shape index: {}]   ;;  %s545_s1 = inlined_call_operand.hbm [shape: bf16[320,128], index: 1, kind: input, shape index: {}]   ;;  %s546_s2 = inlined_call_operand.vmem [shape: f32[32,4], index: 2, kind: output, shape index: {}]  }
   0x1   :  { %s15_s10 = sshll.u32 %s490_s9, 4  ;;  %s466_s13 = scalar_lea.hbm %s545_s1, 2560  ;;  %s16_s10 = int_to_ptr.vmem [resolvable:$true] %s15_s10 }
   0x2   :  { %p467_p0 = scmp.ne.s32.totalorder %s545_s1, %s466_s13  ;;  %p470_p1 = scmp.lt.u32.totalorder %s466_s13, %s545_s1 }
   0x4   :  { %p472_p2 = pnand %p470_p1, %p467_p0 }
   0x6   :  { %475 = shalt.err (!%p472_p2)
}
   0x7   :  { %s476_s18 = scalar_lea.vmem %s16_s10, 2560  ;;  %p481_p4 = scmp.lt.s32.totalorder %s16_s10, %s16_s10 }
   0x8   :  { %p477_p3 = scmp.ne.s32.totalorder %s16_s10, %s476_s18  ;;  %p482_p5 = scmp.lt.s32.totalorder %s476_s18, %s476_s18 }
   0xa   :  { %p483_p6 = por %p482_p5, %p481_p4 }
   0xc   :  { %p484_p7 = pnand %p483_p6, %p477_p3 }
   0xe   :  { %487 = shalt.err (!%p484_p7)
}
   0xf   :  { %s491_s19 = smov 64   ;;  %s492_s20 = smov 4  }
  0x10   :  { %21 = dma.hbm_to_vmem [thread:$0]  %s545_s1, 2560, %s16_s10, [#allocation3], %s491_s19, %s491_s19, %s492_s20  }
  0x11   :  { %488 = dma.done.wait [#allocation3], 2560  }
  0x12   :  { %489 = vsyncadd [#allocation3], 4294964736  ;;  %vm46_vm0 = vcmask 1043456   ;;  %v32_v0 = vld [vmem:[#allocation2] sm:$0xf]  ;;  %v27_v2 = vld [vmem:[%s544_s0 + $0x8] sm:$0xff]  ;;  %v35_v22 = vlaneseq }
  0x13   :  { %v26_v1 = vld [vmem:[%s544_s0] sm:$0xff]  ;;  %vm39_vm1 = vcmask 64512   ;;  %446 = vmatprep.subr.msk.bf16.mxu0 %vm46_vm0, %v32_v0  ;;  %v48_v3 = vsel %vm46_vm0, %v32_v0, 0  ;;  %v28_v5 = vld [vmem:[%s544_s0 + $0x10] sm:$0xff]  ;;  %v29_v6 = vld [vmem:[%s544_s0 + $0x18] sm:$0xff]  ;;  %vm349_vm2 = vcmask 31744  }
  0x14   :  { %v30_v4 = vpack.c.bf16 %v27_v2, %v26_v1  ;;  %401 = vmatpush3.bf16.msra.mxu0 %v48_v3  ;;  %v31_v7 = vpack.c.bf16 %v29_v6, %v28_v5  ;;  %v450_v8 = vld [vmem:[#allocation2 + $0x10] sm:$0xff]   ;;  %v451_v9 = vld [vmem:[#allocation2 + $0x18] sm:$0xff]   ;;  %v452_v10 = vld [vmem:[#allocation2 + $0x20] sm:$0xff]   ;;  %v36_v23 = vshrl.u32 %v35_v22, 7 }
  0x15   :  { %406 = vmatprep.subr.bf16.mxu1 %v450_v8  ;;  %v453_v11 = vld [vmem:[#allocation2 + $0x28] sm:$0xff]   ;;  %v454_v12 = vld [vmem:[#allocation2 + $0x30] sm:$0xff]   ;;  %v455_v13 = vld [vmem:[#allocation2 + $0x38] sm:$0xff]  }
  0x16   :  { %402 = vmatprep.mubr.msk.bf16.mxu0 %vm39_vm1, %v30_v4  ;;  %407 = vmatpush3.bf16.msra.mxu1 %v450_v8  ;;  %v456_v14 = vld [vmem:[#allocation2 + $0x40] sm:$0xff]   ;;  %v457_v15 = vld [vmem:[#allocation2 + $0x48] sm:$0xff]   ;;  %v458_v16 = vld [vmem:[#allocation2 + $0x58] sm:$0xff]   ;;  %v37_v26 = vsub.s32 0, %v36_v23 }
  0x17   :  { %403 = vmatmul.mubr.msk.bf16.vlgmr.msra.gmra.mrb[0].mxu0 %vm39_vm1, %v31_v7  ;;  %408 = vmatprep.subr.bf16.mxu1 %v451_v9  ;;  %v459_v17 = vld [vmem:[#allocation2 + $0x60] sm:$0xff]   ;;  %v460_v18 = vld [vmem:[#allocation2 + $0x68] sm:$0xff]   ;;  %v461_v19 = vld [vmem:[#allocation2 + $0x70] sm:$0xff]  }
  0x18   :  { %426 = vmatprep.subr.bf16.mxu0 %v458_v16  ;;  %v462_v20 = vld [vmem:[#allocation2 + $0x78] sm:$0xff]   ;;  %v463_v21 = vld [vmem:[#allocation2 + $0x80] sm:$0xff]   ;;  %v33_v24 = vld [vmem:[#allocation2 + $0x8] sm:$0x1] }
  0x19   :  { %427 = vmatpush3.bf16.msra.mxu0 %v458_v16  ;;  %v34_v25 = vunpack.c.l.bf16 %v33_v24  ;;  %v464_v42 = vld [vmem:[#allocation2 + $0x88] sm:$0xff]   ;;  %v465_v43 = vld [vmem:[#allocation2 + $0x90] sm:$0xff]   ;;  %v244_v61 = vld [vmem:[#allocation2 + $0x98] sm:$0x1] }
  0x1a   :  { %409 = vmatpush3.bf16.msra.mxu1 %v451_v9  ;;  %428 = vmatprep.subr.bf16.mxu0 %v459_v17  ;;  %v119_v44 = vld [vmem:[#allocation2 + $0x50] sm:$0x1]  ;;  %v245_v62 = vunpack.c.l.bf16 %v244_v61 }
  0x1b   :  { %410 = vmatprep.subr.bf16.mxu1 %v452_v10  ;;  %v38_v27 = vrot.slane %v34_v25, %v37_v26  ;;  %v120_v45 = vunpack.c.l.bf16 %v119_v44 }
  0x1c   :  { %v251_v63 = vrot.slane %v245_v62, %v37_v26 }
  0x1d   :  { %429 = vmatpush3.bf16.msra.mxu0 %v459_v17  ;;  %v126_v46 = vrot.slane %v120_v45, %v37_v26 }
  0x1e   :  { %411 = vmatpush3.bf16.msra.mxu1 %v452_v10  ;;  %430 = vmatprep.subr.bf16.mxu0 %v460_v18 }
  0x1f   :  { %412 = vmatprep.subr.bf16.mxu1 %v453_v11 }
  0x21   :  { %431 = vmatpush3.bf16.msra.mxu0 %v460_v18 }
  0x22   :  { %413 = vmatpush3.bf16.msra.mxu1 %v453_v11  ;;  %432 = vmatprep.subr.bf16.mxu0 %v461_v19 }
  0x23   :  { %414 = vmatprep.subr.bf16.mxu1 %v454_v12 }
  0x25   :  { %433 = vmatpush3.bf16.msra.mxu0 %v461_v19 }
  0x26   :  { %415 = vmatpush3.bf16.msra.mxu1 %v454_v12  ;;  %434 = vmatprep.subr.bf16.mxu0 %v462_v20 }
  0x27   :  { %416 = vmatprep.subr.bf16.mxu1 %v455_v13 }
  0x29   :  { %435 = vmatpush3.bf16.msra.mxu0 %v462_v20 }
  0x2a   :  { %417 = vmatpush3.bf16.msra.mxu1 %v455_v13  ;;  %436 = vmatprep.subr.bf16.mxu0 %v463_v21 }
  0x2b   :  { %418 = vmatprep.subr.bf16.mxu1 %v456_v14 }
  0x2d   :  { %437 = vmatpush3.bf16.msra.mxu0 %v463_v21 }
  0x2e   :  { %419 = vmatpush3.bf16.msra.mxu1 %v456_v14  ;;  %438 = vmatprep.subr.bf16.mxu0 %v464_v42 }
  0x2f   :  { %420 = vmatprep.subr.bf16.mxu1 %v457_v15 }
  0x31   :  { %439 = vmatpush3.bf16.msra.mxu0 %v464_v42 }
  0x32   :  { %421 = vmatpush3.bf16.msra.mxu1 %v457_v15  ;;  %440 = vmatprep.subr.bf16.mxu0 %v465_v43 }
  0x35   :  { %441 = vmatpush3.bf16.msra.mxu0 %v465_v43 }
  0xea   :  { %v404_v28 = vpop.f32.mrb[0].mxu0 }
  0xeb   :  { %v93_v29 = vadd.f32 %v404_v28, %v38_v27  ;;  %v84_v30 = vpop.f32.mrb[1].mxu0 }
  0xec   :  { %v85_v31 = vadd.f32 %v84_v30, %v38_v27  ;;  %v405_v32 = vpop.f32.mrb[2].mxu0 }
  0xed   :  { %v96_v33 = vadd.f32 %v405_v32, %v38_v27  ;;  %v87_v34 = vpop.f32.mrb[3].mxu0  ;;  %v101_v36 = vmax.f32 %v93_v29, 0.0 }
  0xee   :  { %v88_v35 = vadd.f32 %v87_v34, %v38_v27  ;;  %v99_v38 = vmax.f32 %v85_v31, 0.0 }
  0xef   :  { %v102_v37 = vmax.f32 %v96_v33, 0.0 }
  0xf0   :  { %v100_v39 = vmax.f32 %v88_v35, 0.0 }
  0xf1   :  { %v122_v40 = vpack.c.bf16 %v102_v37, %v101_v36 }
  0xf2   :  { %v121_v41 = vpack.c.bf16 %v100_v39, %v99_v38 }
  0xf4   :  { %422 = vmatprep.mubr.bf16.mxu1 %v121_v41 }
  0xf5   :  { %423 = vmatmul.mubr.bf16.vlgmr.msra.gmra.mrb[0].mxu1 %v122_v40 }
 0x1c8   :  { %v424_v47 = vpop.f32.mrb[0].mxu1 }
 0x1c9   :  { %v218_v48 = vadd.f32 %v424_v47, %v126_v46  ;;  %v209_v49 = vpop.f32.mrb[1].mxu1 }
 0x1ca   :  { %v210_v50 = vadd.f32 %v209_v49, %v126_v46  ;;  %v425_v51 = vpop.f32.mrb[2].mxu1 }
 0x1cb   :  { %v221_v52 = vadd.f32 %v425_v51, %v126_v46  ;;  %v212_v53 = vpop.f32.mrb[3].mxu1  ;;  %v226_v55 = vmax.f32 %v218_v48, 0.0 }
 0x1cc   :  { %v213_v54 = vadd.f32 %v212_v53, %v126_v46  ;;  %v224_v57 = vmax.f32 %v210_v50, 0.0 }
 0x1cd   :  { %v227_v56 = vmax.f32 %v221_v52, 0.0 }
 0x1ce   :  { %v225_v58 = vmax.f32 %v213_v54, 0.0 }
 0x1cf   :  { %v247_v59 = vpack.c.bf16 %v227_v56, %v226_v55 }
 0x1d0   :  { %v246_v60 = vpack.c.bf16 %v225_v58, %v224_v57 }
 0x1d2   :  { %442 = vmatprep.mubr.bf16.mxu0 %v246_v60 }
 0x1d3   :  { %443 = vmatmul.mubr.bf16.vlgmr.msra.gmra.mrb[4].mxu0 %v247_v59 }
 0x2a6   :  { %v444_v0 = vpop.f32.mrb[4].mxu0 }
 0x2a7   :  { %v343_v1 = vadd.f32 %v444_v0, %v251_v63  ;;  %v334_v2 = vpop.f32.mrb[5].mxu0 }
 0x2a8   :  { %v335_v3 = vadd.f32 %v334_v2, %v251_v63  ;;  %v445_v4 = vpop.f32.mrb[6].mxu0 }
 0x2a9   :  { %352 = vst.msk [vmem:[%s546_s2 + $0x10] sm:$0xff] %vm349_vm2, %v343_v1  ;;  %v346_v5 = vadd.f32 %v445_v4, %v251_v63  ;;  %v337_v6 = vpop.f32.mrb[7].mxu0 }
 0x2aa   :  { %350 = vst.msk [vmem:[%s546_s2] sm:$0xff] %vm349_vm2, %v335_v3  ;;  %v338_v7 = vadd.f32 %v337_v6, %v251_v63 }
 0x2ab   :  { %353 = vst.msk [vmem:[%s546_s2 + $0x18] sm:$0xff] %vm349_vm2, %v346_v5 }
 0x2ac   :  { %351 = vst.msk [vmem:[%s546_s2 + $0x8] sm:$0xff] %vm349_vm2, %v338_v7 }
 0x2ad   :  { %358 = vsyncpa [#allocation3], 1 }

</bundles_post_ra>
